<compile_context>
chip_gen: v5e
topology: v5e:2x2
jax: 0.10.0
libtpu: 0.0.40
codegen_flags: <defaults>
</compile_context>

<pallas_src>
import numpy as np
import jax
import jax.numpy as jnp
from jax.experimental import pallas as pl
from jax.experimental.pallas import tpu as pltpu


def _build_pe_table(d_model: int, max_len: int) -> jnp.ndarray:
    """Deterministic sinusoidal table, identical to the PyTorch __init__."""
    position = np.arange(max_len, dtype=np.float32)[:, None]                  # (L, 1)
    div_term = np.exp(np.arange(0, d_model, 2, dtype=np.float32)
                      * (-np.log(10000.0) / d_model))                         # (ceil(D/2),)
    pe = np.zeros((max_len, d_model), dtype=np.float32)
    pe[:, 0::2] = np.sin(position * div_term)
    pe[:, 1::2] = np.cos(position * div_term[: d_model // 2])                 # guard odd D
    return jnp.asarray(pe)


def _make_kernel(batch: int, d_model: int, out_dtype):
    """Kernel over 2-D tiles: x/o are (TS, B*D), pe is (TS, D)."""
    lane_aligned = (d_model % 128 == 0)

    def kernel(x_ref, pe_ref, o_ref):
        pe = pe_ref[...].astype(out_dtype)                       # (TS, D) fp32
        if lane_aligned:
            # Per-batch chunks of width D: every load/add/store is a dense,
            # unmasked 128-multiple lane slab; pe is reused from registers.
            for b in range(batch):
                sl = slice(b * d_model, (b + 1) * d_model)
                o_ref[:, sl] = x_ref[:, sl].astype(out_dtype) + pe
        else:
            # D not lane-aligned: broadcast pe across the batch in-registers
            # (lane concat is XLU/VPU work, free under the DMA bound) and do a
            # single full-width add + store of the B*D row.
            pe_row = pe if batch == 1 else jnp.concatenate([pe] * batch, axis=-1)
            o_ref[...] = x_ref[...].astype(out_dtype) + pe_row

    return kernel


def positional_encoding(x: jnp.ndarray, pe_table: jnp.ndarray,
                        *, donate_x: bool = True) -> jnp.ndarray:
    """x: (S, B, D); pe_table: (max_len, D). Returns (S, B, D) in promoted dtype."""
    S, B, D = x.shape
    if S > pe_table.shape[0]:
        raise ValueError(f"seq_len {S} exceeds max_len {pe_table.shape[0]}")

    out_dtype = jnp.promote_types(x.dtype, pe_table.dtype)       # match torch promotion
    BD = B * D

    # Lane-dense 2-D layout: row s of x2d is [x[s,0,:], x[s,1,:], ...].  No
    # astype and no pe tiling in the wrapper -> HBM traffic is the minimum
    # read-x + read-pe(S*D) + write-out.
    x2d = x.reshape(S, BD)                                       # native dtype, free reshape
    pe2 = pe_table[:S, :]                                        # (S, D) fp32

    x_item = jnp.dtype(x.dtype).itemsize
    o_item = jnp.dtype(out_dtype).itemsize
    pe_item = jnp.dtype(pe_table.dtype).itemsize

    # Generation-aware VMEM budget for the double-buffered working set:
    # v5e/v6e (128 MiB physical) -> 24 MiB, v7x (64 MiB physical) -> 24 MiB cap
    # already leaves headroom; fall back conservatively if the query fails.
    try:
        vmem_cap = int(pltpu.get_tpu_info().vmem_capacity_bytes)
    except Exception:  # pragma: no cover - defensive for interpret/odd backends
        vmem_cap = 64 * 1024 * 1024
    vmem_budget = min(24 * 1024 * 1024, (vmem_cap * 3) // 8)

    # Per seq-row bytes with default Buffered(2) pipelining on every operand.
    per_row = 2 * BD * x_item + 2 * BD * o_item + 2 * D * pe_item
    max_rows = max(8, (vmem_budget // per_row) // 8 * 8)

    if S > max_rows:
        TS = max_rows
    elif S >= 16:
        # Split into >= 2 grid steps so the "parallel" seq axis can shard
        # across both v7x TensorCores (negligible cost on single-TC chips).
        half = (S + 1) // 2
        TS = min(S, min(max_rows, ((half + 7) // 8) * 8))
    else:
        TS = S                                                   # full extent (tiny S)
    grid = (pl.cdiv(S, TS),)

    kernel = _make_kernel(B, D, out_dtype)

    # Reuse x's HBM buffer for the output when no promotion happens.
    aliases = {0: 0} if (donate_x and x.dtype == out_dtype) else {}

    out2d = pl.pallas_call(
        kernel,
        out_shape=jax.ShapeDtypeStruct((S, BD), out_dtype),
        grid=grid,
        in_specs=[
            pl.BlockSpec((TS, BD), lambda i: (i, 0)),            # x tile, native dtype
            pl.BlockSpec((TS, D), lambda i: (i, 0)),             # pe tile, (S, D) only
        ],
        out_specs=pl.BlockSpec((TS, BD), lambda i: (i, 0)),
        input_output_aliases=aliases,
        compiler_params=pltpu.CompilerParams(
            dimension_semantics=("parallel",),
            vmem_limit_bytes=32 * 1024 * 1024),
    )(x2d, pe2)

    return out2d.reshape(S, B, D)


if __name__ == "__main__":
    d_model = 32
    max_len = 64
    seq_len = 8
    batch = 2

    key = jax.random.PRNGKey(0)
    x = jax.random.normal(key, (seq_len, batch, d_model), dtype=jnp.float32)

    pe_table = _build_pe_table(d_model, max_len)

    # Reference computed first (x's buffer may be aliased into the output).
    ref = x + pe_table[:seq_len][:, None, :]
    ref = jax.block_until_ready(ref)

    out = positional_encoding(x, pe_table)
    out = jax.block_until_ready(out)

    np.testing.assert_allclose(np.asarray(out), np.asarray(ref), rtol=1e-6, atol=1e-6)

    print("KERNEL_OK")
</pallas_src>

<mosaic_0001>
module attributes {stable_mosaic.version = 11 : i64} {
  func.func @kernel(%arg0: i32, %arg1: memref<8x64xf32, #tpu.memory_space<vmem>>, %arg2: memref<8x32xf32, #tpu.memory_space<vmem>>, %arg3: memref<8x64xf32, #tpu.memory_space<vmem>>) attributes {dimension_semantics = [#tpu.dimension_semantics<parallel>], iteration_bounds = array<i64: 1>, scalar_prefetch = 0 : i64, scratch_operands = 0 : i64, tpu.core_type = #tpu.core_type<tc>, window_params = [{transform_indices = @transform_0, window_bounds = array<i64: 8, 64>}, {transform_indices = @transform_1, window_bounds = array<i64: 8, 32>}, {transform_indices = @transform_2, window_bounds = array<i64: 8, 64>}]} {
    %c0 = arith.constant 0 : index
    %c0_0 = arith.constant 0 : index
    %0 = vector.load %arg2[%c0, %c0_0] : memref<8x32xf32, #tpu.memory_space<vmem>>, vector<8x32xf32>
    %1 = tpu.concatenate %0, %0 in 1 : vector<8x32xf32>, vector<8x32xf32> -> vector<8x64xf32>
    %c0_1 = arith.constant 0 : index
    %c0_2 = arith.constant 0 : index
    %2 = vector.load %arg1[%c0_1, %c0_2] : memref<8x64xf32, #tpu.memory_space<vmem>>, vector<8x64xf32>
    %3 = arith.addf %2, %1 : vector<8x64xf32>
    %c0_3 = arith.constant 0 : index
    %c0_4 = arith.constant 0 : index
    %4 = vector.load %arg3[%c0_3, %c0_4] : memref<8x64xf32, #tpu.memory_space<vmem>>, vector<8x64xf32>
    tpu.vector_store %arg3[%c0_3, %c0_4], %3 {strides = array<i32>} : memref<8x64xf32, #tpu.memory_space<vmem>>, vector<8x64xf32>,
    return
  }
  func.func @transform_0(%arg0: i32) -> (i32, i32) {
    %c0_i32 = arith.constant 0 : i32
    %c0_i32_0 = arith.constant 0 : i32
    return %arg0, %c0_i32 : i32, i32
  }
  func.func @transform_1(%arg0: i32) -> (i32, i32) {
    %c0_i32 = arith.constant 0 : i32
    %c0_i32_0 = arith.constant 0 : i32
    return %arg0, %c0_i32 : i32, i32
  }
  func.func @transform_2(%arg0: i32) -> (i32, i32) {
    %c0_i32 = arith.constant 0 : i32
    %c0_i32_0 = arith.constant 0 : i32
    return %arg0, %c0_i32 : i32, i32
  }
}

</mosaic_0001>

<bundles_post_ra>
// kernel: tpu_custom_call.1
= control target key start
LH: loop header
LB: loop body
LE: loop exit
PB: predicated region body
PF: predicated region fallthrough
CT: control target
= control target key end

     0   :  { %7 = vsyncpa [#allocation3], 0  ;;  %s136_s0 = inlined_call_operand.hbm [shape: f32[8,64], index: 0, kind: input, shape index: {}, may-alias: {0,2}]   ;;  %s137_s1 = inlined_call_operand.vmem [shape: f32[8,32], index: 1, kind: input, shape index: {}]   ;;  %s138_s2 = inlined_call_operand.hbm [shape: f32[8,64], index: 2, kind: output, shape index: {}, may-alias: {0,2}]  }
   0x1   :  { %8 = vsyncpa [#allocation4], 0  ;;  %s14_s11 = sshll.u32 %s136_s0, 4  ;;  %s109_s12 = smov [#allocation2]   ;;  %s15_s11 = int_to_ptr.hbm [resolvable:$true] %s14_s11 }
   0x2   :  { %s16_s13 = sshll.u32 %s109_s12, 4  ;;  %s17_s13 = int_to_ptr.vmem [resolvable:$true] %s16_s13 }
   0x3   :  { %19 = dma.hbm_to_vmem [thread:$0]  %s15_s11, 128, %s17_s13, [#allocation3]  }
   0x4   :  { %105 = dma.done.wait [#allocation3], 128  }
   0x5   :  { %106 = vsyncadd [#allocation3], 4294967168  ;;  %v26_v0 = vld [vmem:[%s137_s1] sm:$0xff]  ;;  %s110_s16 = smov 32   ;;  %vm31_vm0 = vcmask 261120   ;;  %s111_s17 = smov [#allocation5]  }
   0x6   :  { %28 = vrot.lane.b32.xlu0 %v26_v0, %s110_s16  ;;  %v33_v1 = vld [vmem:[#allocation2] sm:$0xff]  ;;  %s42_s18 = sshll.u32 %s111_s17, 4  ;;  %s44_s0 = sshll.u32 %s138_s2, 4  ;;  %vm35_vm1 = vcmask 523264   ;;  %s43_s18 = int_to_ptr.vmem [resolvable:$true] %s42_s18  ;;  %s45_s0 = int_to_ptr.hbm [resolvable:$true] %s44_s0 }
  0x78   :  { %v29_v2 = vpop.permute.xlu0 %28 }
  0x79   :  { %v32_v3 = vsel %vm31_vm0, %v26_v0, %v29_v2 }
  0x7a   :  { %v34_v4 = vadd.f32 %v33_v1, %v32_v3 }
  0x7c   :  { %36 = vst.msk [vmem:[#allocation5] sm:$0xff] %vm35_vm1, %v34_v4 }
  0x7d   :  { %47 = dma.vmem_to_hbm [thread:$0]  %s43_s18, 128, %s45_s0, [#allocation4]  }
  0x7e   :  { %107 = dma.done.wait [#allocation4], 128  }
  0x7f   :  { %108 = vsyncadd [#allocation4], 4294967168 }
  0x80   :  { %52 = vsyncpa [#allocation3], 1 }
  0x81   :  { %53 = vsyncpa [#allocation4], 1 }

</bundles_post_ra>
